<compile_context>
chip_gen: v7x
topology: tpu7x:2x2x1
jax: 0.10.0
libtpu: 0.0.40
codegen_flags: <defaults>
</compile_context>

<pallas_src>
import functools

import jax
import jax.numpy as jnp
from jax.experimental import pallas as pl
from jax.experimental.pallas import tpu as pltpu


def _complex_conv2d_kernel(x_ref, w_ref, b_ref, *out_refs, nb, KH, OH, OWC,
                           add_abs, eps, mxu_dtype):
    # x_ref : (nb, H, W*2*Cin)          lane-dense packed [xr | xi] input
    # w_ref : (KH*W*2*Cin, 2*OW*Cout)   block-Toeplitz complex weight (bf16)
    # b_ref : (1, 2*OW*Cout)            packed bias row (f32)
    # out_refs: add_abs=False -> (br_ref, bi_ref) each (nb, OH, OW*Cout)
    #           add_abs=True  -> (mag_ref,)       (nb, OH, OW*Cout)
    x = x_ref[...]                                         # (nb, H, W*C2)

    # Row-wise implicit im2col: output row oh needs input rows oh..oh+KH-1.
    # KH static sublane-shifted slabs concatenated along (lane-dense) lanes;
    # the reshape only merges leading dims (last dim unchanged).
    patch = jnp.concatenate([x[:, kh:kh + OH, :] for kh in range(KH)],
                            axis=-1)                       # (nb, OH, KH*W*C2)
    patch = patch.reshape(nb * OH, patch.shape[-1]).astype(mxu_dtype)

    # Single MXU matmul: 4 real convs + complex combine, f32 accumulation.
    acc = jnp.dot(patch, w_ref[...], preferred_element_type=jnp.float32)
    acc = acc + b_ref[...]                                 # (nb*OH, 2*OW*Cout)

    if add_abs:
        br = acc[:, :OWC]
        bi = acc[:, OWC:]
        mag = jnp.sqrt(br * br + bi * bi + jnp.float32(eps))
        out_refs[0][...] = mag.reshape(nb, OH, OWC).astype(out_refs[0].dtype)
    else:
        out_refs[0][...] = acc[:, :OWC].reshape(nb, OH, OWC).astype(out_refs[0].dtype)
        out_refs[1][...] = acc[:, OWC:].reshape(nb, OH, OWC).astype(out_refs[1].dtype)


def _choose_batch_fold(N, per_elem_bytes, budget_bytes=20 * 1024 * 1024,
                       min_steps=2):
    """Largest divisor of N fitting the VMEM budget while keeping >= min_steps
    grid steps when N >= min_steps (so both v7x TensorCores get work)."""
    if N <= 1:
        return 1
    nb_cap = max(1, budget_bytes // max(1, per_elem_bytes))
    nb = max(1, min(nb_cap, N // min_steps))
    while N % nb:
        nb -= 1
    return nb


def complex_conv2d(xr, xi, wr, wi, br_bias, bi_bias, *, add_abs=False,
                   eps=1e-5, mxu_dtype=jnp.bfloat16):
    """ComplexConvXd.forward with conv_ins = nn.Conv2d (stride=1, no padding).

    xr, xi : (N, H, W, Cin)       real / imag parts (NHWC)
    wr, wi : (KH, KW, Cin, Cout)  real / imag conv weights (HWIO)
    br_bias, bi_bias : (1, Cout)  biases of the real / imag convs
    Returns (br, bi) if add_abs=False else sqrt(br^2 + bi^2 + eps).
    """
    N, H, W, Cin = xr.shape
    KH, KW, _, Cout = wr.shape
    OH, OW = H - KH + 1, W - KW + 1
    C2 = 2 * Cin
    WC2 = W * C2
    OWC = OW * Cout
    out_dtype = xr.dtype

    # ---------- wrapper-side packing (one-time layout plumbing) ----------
    # Lane-dense input: channels packed [xr | xi], then (W, 2*Cin) flattened
    # into the lane dimension (W*2*Cin = 128 at the demo shapes).
    x_packed = jnp.concatenate([xr, xi], axis=-1).reshape(N, H, WC2)

    # Per-tap complex block weight: [pr | pi] @ [[Wr, Wi], [-Wi, Wr]] = [br | bi]
    w_top = jnp.concatenate([wr, wi], axis=-1)             # (KH, KW, Cin, 2*Cout)
    w_bot = jnp.concatenate([-wi, wr], axis=-1)            # (KH, KW, Cin, 2*Cout)
    w_blk = jnp.concatenate([w_top, w_bot], axis=2)        # (KH, KW, C2, 2*Cout)
    w_blk = w_blk.reshape(KH, KW, C2, 2, Cout).astype(jnp.float32)

    # Block-Toeplitz expansion along W so the matmul output is lane-dense:
    #   w_toep[kh, w, c2, ri, ow, :] = w_blk[kh, w-ow, c2, ri, :]  (0 <= w-ow < KW)
    w_toep = jnp.zeros((KH, W, C2, 2, OW, Cout), jnp.float32)
    for kw in range(KW):
        sel = jnp.eye(W, OW, k=-kw, dtype=jnp.float32)     # sel[w,ow]=1 iff w==ow+kw
        w_toep = w_toep + (sel[None, :, None, None, :, None] *
                           w_blk[:, kw][:, None, :, :, None, :])
    w_flat = w_toep.reshape(KH * WC2, 2 * OWC).astype(mxu_dtype)

    # Packed bias row [b_r - b_i | b_r + b_i], tiled over ow (stays f32).
    b_row = jnp.concatenate(
        [jnp.tile((br_bias - bi_bias).astype(jnp.float32), (1, OW)),
         jnp.tile((br_bias + bi_bias).astype(jnp.float32), (1, OW))], axis=-1)

    # ---------- batch folding / grid sizing ----------
    n_out = 1 if add_abs else 2
    itm_io = jnp.dtype(out_dtype).itemsize
    itm_mxu = jnp.dtype(mxu_dtype).itemsize
    per_elem = (2 * H * WC2 * itm_io                      # double-buffered input
                + 2 * n_out * OH * OWC * itm_io           # double-buffered outputs
                + OH * KH * WC2 * itm_mxu                 # in-register patch
                + OH * 2 * OWC * 4)                       # f32 accumulator
    nb = _choose_batch_fold(N, per_elem)
    grid = (N // nb,)

    kernel = functools.partial(_complex_conv2d_kernel, nb=nb, KH=KH, OH=OH,
                               OWC=OWC, add_abs=add_abs, eps=eps,
                               mxu_dtype=mxu_dtype)

    out_block = pl.BlockSpec((nb, OH, OWC), lambda n: (n, 0, 0))
    if add_abs:
        out_shape = jax.ShapeDtypeStruct((N, OH, OWC), out_dtype)
        out_specs = out_block
    else:
        out_shape = (jax.ShapeDtypeStruct((N, OH, OWC), out_dtype),
                     jax.ShapeDtypeStruct((N, OH, OWC), out_dtype))
        out_specs = (out_block, out_block)

    out = pl.pallas_call(
        kernel,
        out_shape=out_shape,
        grid_spec=pltpu.PrefetchScalarGridSpec(
            num_scalar_prefetch=0,
            grid=grid,
            in_specs=[
                pl.BlockSpec((nb, H, WC2), lambda n: (n, 0, 0)),
                pl.BlockSpec((KH * WC2, 2 * OWC), lambda n: (0, 0)),
                pl.BlockSpec((1, 2 * OWC), lambda n: (0, 0)),
            ],
            out_specs=out_specs,
        ),
        compiler_params=pltpu.CompilerParams(
            dimension_semantics=("parallel",),   # batch groups are independent
            # >= scoped default on v5e(16)/v6e(32)/v7x(32) MiB, safely below
            # v7x's 64 MiB physical VMEM; nb was budgeted to ~20 MiB of blocks.
            vmem_limit_bytes=32 * 1024 * 1024),
    )(x_packed, w_flat, b_row)

    # Only free leading-dim / contiguous reshapes below (no lane slicing).
    if add_abs:
        return out.reshape(N, OH, OW, Cout)
    br_p, bi_p = out
    return br_p.reshape(N, OH, OW, Cout), bi_p.reshape(N, OH, OW, Cout)


def _conv2d_ref(x, w, b):
    out = jax.lax.conv_general_dilated(
        x, w, window_strides=(1, 1), padding="VALID",
        dimension_numbers=("NHWC", "HWIO", "NHWC"))
    return out + b.reshape(1, 1, 1, -1)


if __name__ == "__main__":
    # Shapes consistent with Conv2d(in_channels=4, out_channels=8, kernel=3).
    N, H, W, Cin, Cout, K = 2, 16, 16, 4, 8, 3
    eps = 1e-5

    key = jax.random.PRNGKey(0)
    k1, k2, k3, k4, k5, k6 = jax.random.split(key, 6)

    # complex input (real, imag), NHWC layout
    xr = jax.random.normal(k1, (N, H, W, Cin), jnp.float32)
    xi = jax.random.normal(k2, (N, H, W, Cin), jnp.float32)

    # deterministic parameter init (nn.Conv2d(Cin, Cout, K) shapes), HWIO
    scale = 1.0 / (Cin * K * K) ** 0.5
    wr = jax.random.uniform(k3, (K, K, Cin, Cout), jnp.float32, -scale, scale)
    wi = jax.random.uniform(k4, (K, K, Cin, Cout), jnp.float32, -scale, scale)
    br_bias = jax.random.uniform(k5, (1, Cout), jnp.float32, -scale, scale)
    bi_bias = jax.random.uniform(k6, (1, Cout), jnp.float32, -scale, scale)

    # Pallas kernel: complex output and (separately) magnitude output
    br, bi = complex_conv2d(xr, xi, wr, wi, br_bias, bi_bias,
                            add_abs=False, eps=eps)
    mag = complex_conv2d(xr, xi, wr, wi, br_bias, bi_bias,
                         add_abs=True, eps=eps)
    jax.block_until_ready((br, bi, mag))

    # plain-JAX reference for correctness
    real_xr = _conv2d_ref(xr, wr, br_bias[0])
    imag_xi = _conv2d_ref(xi, wi, bi_bias[0])
    real_xi = _conv2d_ref(xi, wr, br_bias[0])
    imag_xr = _conv2d_ref(xr, wi, bi_bias[0])
    br_ref = real_xr - imag_xi
    bi_ref = real_xi + imag_xr
    mag_ref = jnp.sqrt(br_ref ** 2 + bi_ref ** 2 + eps)

    # bf16 MXU operands (f32 accumulation) -> tolerance loosened vs f32 ref.
    tol = 5e-2
    assert jnp.max(jnp.abs(br - br_ref)) < tol
    assert jnp.max(jnp.abs(bi - bi_ref)) < tol
    assert jnp.max(jnp.abs(mag - mag_ref)) < tol

    print("KERNEL_OK")
</pallas_src>

<mosaic_0001>
module attributes {stable_mosaic.version = 11 : i64} {
  func.func @_complex_conv2d_kernel(%arg0: i32, %arg1: memref<1x16x128xf32, #tpu.memory_space<vmem>>, %arg2: memref<384x224xbf16, #tpu.memory_space<vmem>>, %arg3: memref<1x224xf32, #tpu.memory_space<vmem>>, %arg4: memref<1x14x112xf32, #tpu.memory_space<vmem>>, %arg5: memref<1x14x112xf32, #tpu.memory_space<vmem>>) attributes {dimension_semantics = [#tpu.dimension_semantics<parallel>], iteration_bounds = array<i64: 2>, scalar_prefetch = 0 : i64, scratch_operands = 0 : i64, tpu.core_type = #tpu.core_type<tc>, window_params = [{transform_indices = @transform_0, window_bounds = array<i64: 1, 16, 128>}, {pipeline_mode = #tpu.pipeline_mode<synchronous>, transform_indices = @transform_1, window_bounds = array<i64: 384, 224>}, {pipeline_mode = #tpu.pipeline_mode<synchronous>, transform_indices = @transform_2, window_bounds = array<i64: 1, 224>}, {transform_indices = @transform_3, window_bounds = array<i64: 1, 14, 112>}, {transform_indices = @transform_4, window_bounds = array<i64: 1, 14, 112>}]} {
    %c0 = arith.constant 0 : index
    %c0_0 = arith.constant 0 : index
    %c0_1 = arith.constant 0 : index
    %0 = vector.load %arg1[%c0, %c0_0, %c0_1] : memref<1x16x128xf32, #tpu.memory_space<vmem>>, vector<1x16x128xf32>
    %1 = vector.extract_strided_slice %0 {offsets = [0, 0, 0], sizes = [1, 14, 128], strides = [1, 1, 1]} : vector<1x16x128xf32> to vector<1x14x128xf32>
    %2 = vector.extract_strided_slice %0 {offsets = [0, 1, 0], sizes = [1, 14, 128], strides = [1, 1, 1]} : vector<1x16x128xf32> to vector<1x14x128xf32>
    %3 = vector.extract_strided_slice %0 {offsets = [0, 2, 0], sizes = [1, 14, 128], strides = [1, 1, 1]} : vector<1x16x128xf32> to vector<1x14x128xf32>
    %4 = tpu.concatenate %1, %2, %3 in 2 : vector<1x14x128xf32>, vector<1x14x128xf32>, vector<1x14x128xf32> -> vector<1x14x384xf32>
    %5 = vector.shape_cast %4 : vector<1x14x384xf32> to vector<14x384xf32>
    %6 = arith.truncf %5 : vector<14x384xf32> to vector<14x384xbf16>
    %c0_2 = arith.constant 0 : index
    %c0_3 = arith.constant 0 : index
    %7 = vector.load %arg2[%c0_2, %c0_3] : memref<384x224xbf16, #tpu.memory_space<vmem>>, vector<384x224xbf16>
    %cst = arith.constant dense<0.000000e+00> : vector<14x224xf32>
    %8 = tpu.matmul %6, %7, %cst {dimension_numbers = #tpu.dot_dimension_numbers<[1], [0], [0], [1], [0, 0, 1, 1], [], []>} : vector<14x384xbf16>, vector<384x224xbf16>, vector<14x224xf32> -> vector<14x224xf32>
    %c0_4 = arith.constant 0 : index
    %c0_5 = arith.constant 0 : index
    %9 = vector.load %arg3[%c0_4, %c0_5] : memref<1x224xf32, #tpu.memory_space<vmem>>, vector<1x224xf32>
    %10 = vector.broadcast %9 : vector<1x224xf32> to vector<14x224xf32>
    %11 = arith.addf %8, %10 : vector<14x224xf32>
    %12 = vector.extract_strided_slice %11 {offsets = [0, 0], sizes = [14, 112], strides = [1, 1]} : vector<14x224xf32> to vector<14x112xf32>
    %13 = vector.shape_cast %12 : vector<14x112xf32> to vector<1x14x112xf32>
    %c0_6 = arith.constant 0 : index
    %c0_7 = arith.constant 0 : index
    %c0_8 = arith.constant 0 : index
    %14 = vector.load %arg4[%c0_6, %c0_7, %c0_8] : memref<1x14x112xf32, #tpu.memory_space<vmem>>, vector<1x14x112xf32>
    tpu.vector_store %arg4[%c0_6, %c0_7, %c0_8], %13 {strides = array<i32>} : memref<1x14x112xf32, #tpu.memory_space<vmem>>, vector<1x14x112xf32>,
    %15 = vector.extract_strided_slice %11 {offsets = [0, 112], sizes = [14, 112], strides = [1, 1]} : vector<14x224xf32> to vector<14x112xf32>
    %16 = vector.shape_cast %15 : vector<14x112xf32> to vector<1x14x112xf32>
    %c0_9 = arith.constant 0 : index
    %c0_10 = arith.constant 0 : index
    %c0_11 = arith.constant 0 : index
    %17 = vector.load %arg5[%c0_9, %c0_10, %c0_11] : memref<1x14x112xf32, #tpu.memory_space<vmem>>, vector<1x14x112xf32>
    tpu.vector_store %arg5[%c0_9, %c0_10, %c0_11], %16 {strides = array<i32>} : memref<1x14x112xf32, #tpu.memory_space<vmem>>, vector<1x14x112xf32>,
    return
  }
  func.func @transform_0(%arg0: i32) -> (i32, i32, i32) {
    %c0_i32 = arith.constant 0 : i32
    %c0_i32_0 = arith.constant 0 : i32
    %c0_i32_1 = arith.constant 0 : i32
    return %arg0, %c0_i32, %c0_i32_0 : i32, i32, i32
  }
  func.func @transform_1(%arg0: i32) -> (i32, i32) {
    %c0_i32 = arith.constant 0 : i32
    %c0_i32_0 = arith.constant 0 : i32
    %c0_i32_1 = arith.constant 0 : i32
    return %c0_i32, %c0_i32_0 : i32, i32
  }
  func.func @transform_2(%arg0: i32) -> (i32, i32) {
    %c0_i32 = arith.constant 0 : i32
    %c0_i32_0 = arith.constant 0 : i32
    %c0_i32_1 = arith.constant 0 : i32
    return %c0_i32, %c0_i32_0 : i32, i32
  }
  func.func @transform_3(%arg0: i32) -> (i32, i32, i32) {
    %c0_i32 = arith.constant 0 : i32
    %c0_i32_0 = arith.constant 0 : i32
    %c0_i32_1 = arith.constant 0 : i32
    return %arg0, %c0_i32, %c0_i32_0 : i32, i32, i32
  }
  func.func @transform_4(%arg0: i32) -> (i32, i32, i32) {
    %c0_i32 = arith.constant 0 : i32
    %c0_i32_0 = arith.constant 0 : i32
    %c0_i32_1 = arith.constant 0 : i32
    return %arg0, %c0_i32, %c0_i32_0 : i32, i32, i32
  }
}

</mosaic_0001>

<bundles_post_ra>
// kernel: tpu_custom_call.1
= control target key start
LH: loop header
LB: loop body
LE: loop exit
PB: predicated region body
PF: predicated region fallthrough
CT: control target
= control target key end

     0   :  { %s917_s15 = smov 0   ;;  %s1097_s0 = inlined_call_operand.vmem [shape: f32[2,16,128], index: 0, kind: input, shape index: {}]   ;;  %s1098_s1 = inlined_call_operand.vmem [shape: bf16[384,224], index: 1, kind: input, shape index: {}]   ;;  %s1099_s2 = inlined_call_operand.vmem [shape: f32[1,224], index: 2, kind: input, shape index: {}]   ;;  %s1100_s3 = inlined_call_operand.vmem [shape: f32[2,14,112], index: 3, kind: output, shape index: {0}]   ;;  %s1101_s4 = inlined_call_operand.vmem [shape: f32[2,14,112], index: 4, kind: output, shape index: {1}]  }
   0x1 LB: > { %s728_s16 = sadd.s32 4294967295, %s888_s15   ;;  %p732_p0 = scmp.ge.s32.totalorder %s888_s15, 1  ;;  %s888_s15 = sphi %s917_s15, %s15_s15  }
   0x2   : > { %p165_p1 = scmp.lt.s32.totalorder %s888_s15, 3 }
   0x4   : > { %p166_p2 = pnand %p732_p0, %p165_p1 }
   0x5   : > { %v810_v0 = vld [vmem:[%s1098_s1 + $0x4] ss:$8 sps:$4 sm:$0xff] (!%p166_p2)   ;;  %v812_v1 = vld [vmem:[%s1098_s1] ss:$8 sps:$4 sm:$0xff] (!%p166_p2)   ;;  %v890_v2 = vmov (!%p166_p2), 0   ;;  %p196_p3 = scmp.lt.s32.totalorder (!%p166_p2), %s728_s16, 1 }
   0x6   : > { %169 = sbr.rel (%p166_p2) target bundleno = 409 (0x199), region = 32  ;;  %606 = vmatprep.mubr.bf16.mxu0 (!%p166_p2), %v890_v2  ;;  %531 = vmatprep.subr.bf16.mxu1 (!%p166_p2), %v810_v0  ;;  %v813_v3 = vld [vmem:[%s1098_s1 + $0x14] ss:$8 sps:$4 sm:$0xff] (!%p166_p2)   ;;  %v815_v4 = vld [vmem:[%s1098_s1 + $0x10] ss:$8 sps:$4 sm:$0xff] (!%p166_p2)   ;;  %vm216_vm0 = vcmask (!%p166_p2), 1046528   ;;  %v281_v0 = vlaneseq (!%p166_p2) }
   0x7   : > { %532 = vmatpush1.bf16.msra.mxu1 (!%p166_p2), %v812_v1  ;;  %v816_v5 = vld [vmem:[%s1098_s1 + $0x24] ss:$8 sps:$4 sm:$0xff] (!%p166_p2)   ;;  %v818_v6 = vld [vmem:[%s1098_s1 + $0x20] ss:$8 sps:$4 sm:$0xff] (!%p166_p2)   ;;  %v819_v7 = vld [vmem:[%s1098_s1 + $0x34] ss:$8 sps:$4 sm:$0xff] (!%p166_p2)  }
   0x8   : > { %533 = vmatprep.subr.bf16.mxu1 (!%p166_p2), %v813_v3  ;;  %v821_v8 = vld [vmem:[%s1098_s1 + $0x30] ss:$8 sps:$4 sm:$0xff] (!%p166_p2)   ;;  %v834_v9 = vld [vmem:[%s1098_s1 + $0x104] ss:$8 sps:$4 sm:$0xff] (!%p166_p2)   ;;  %v838_v11 = vld [vmem:[%s1098_s1 + $0x100] ss:$8 sps:$4 sm:$0xff] (!%p166_p2)  }
   0x9   : > { %v822_v10 = vld [vmem:[%s1098_s1 + $0x44] ss:$8 sps:$4 sm:$0xff] (!%p166_p2)   ;;  %574 = vmatprep.subr.bf16.mxu0 (!%p166_p2), %v834_v9  ;;  %v840_v12 = vld [vmem:[%s1098_s1 + $0x114] ss:$8 sps:$4 sm:$0xff] (!%p166_p2)   ;;  %v824_v13 = vld [vmem:[%s1098_s1 + $0x40] ss:$8 sps:$4 sm:$0xff] (!%p166_p2)  }
   0xa   : > { %575 = vmatpush1.bf16.msra.mxu0 (!%p166_p2), %v838_v11  ;;  %v825_v14 = vld [vmem:[%s1098_s1 + $0x54] ss:$8 sps:$4 sm:$0xff] (!%p166_p2)   ;;  %v844_v15 = vld [vmem:[%s1098_s1 + $0x110] ss:$8 sps:$4 sm:$0xff] (!%p166_p2)   ;;  %v846_v16 = vld [vmem:[%s1098_s1 + $0x124] ss:$8 sps:$4 sm:$0xff] (!%p166_p2)  }
   0xb   : > { %534 = vmatpush1.bf16.msra.mxu1 (!%p166_p2), %v815_v4  ;;  %576 = vmatprep.subr.bf16.mxu0 (!%p166_p2), %v840_v12  ;;  %v827_v17 = vld [vmem:[%s1098_s1 + $0x50] ss:$8 sps:$4 sm:$0xff] (!%p166_p2)   ;;  %v850_v18 = vld [vmem:[%s1098_s1 + $0x120] ss:$8 sps:$4 sm:$0xff] (!%p166_p2)   ;;  %v852_v19 = vld [vmem:[%s1098_s1 + $0x134] ss:$8 sps:$4 sm:$0xff] (!%p166_p2)  }
   0xc   : > { %535 = vmatprep.subr.bf16.mxu1 (!%p166_p2), %v816_v5  ;;  %v828_v20 = vld [vmem:[%s1098_s1 + $0x64] ss:$8 sps:$4 sm:$0xff] (!%p166_p2)   ;;  %v856_v21 = vld [vmem:[%s1098_s1 + $0x130] ss:$8 sps:$4 sm:$0xff] (!%p166_p2)   ;;  %v830_v22 = vld [vmem:[%s1098_s1 + $0x60] ss:$8 sps:$4 sm:$0xff] (!%p166_p2)  }
   0xd   : > { %s1103_s16 = smov (!%p196_p3, %s728_s16), 1  ;;  %v858_v23 = vld [vmem:[%s1098_s1 + $0x144] ss:$8 sps:$4 sm:$0xff]   ;;  %v831_v24 = vld [vmem:[%s1098_s1 + $0x74] ss:$8 sps:$4 sm:$0xff]   ;;  %vm222_vm1 = vcmask 1045504  }
   0xe   : > { %577 = vmatpush1.bf16.msra.mxu0 %v844_v15  ;;  %v833_v25 = vld [vmem:[%s1098_s1 + $0x70] ss:$8 sps:$4 sm:$0xff]   ;;  %v862_v26 = vld [vmem:[%s1098_s1 + $0x140] ss:$8 sps:$4 sm:$0xff]   ;;  %s1007_s21 = sshll.u32 %s1103_s16, 4  ;;  %v282_v1 = vshrl.u32 %v281_v0, 7 }
   0xf   : > { %536 = vmatpush1.bf16.msra.mxu1 %v818_v6  ;;  %578 = vmatprep.subr.bf16.mxu0 %v846_v16  ;;  %v864_v27 = vld [vmem:[%s1098_s1 + $0x154] ss:$8 sps:$4 sm:$0xff]   ;;  %v836_v28 = vld [vmem:[%s1098_s1 + $0x84] ss:$8 sps:$4 sm:$0xff]   ;;  %s200_s28 = scalar_lea.vmem %s1097_s0, %s1007_s21  ;;  %v868_v29 = vld [vmem:[%s1098_s1 + $0x150] ss:$8 sps:$4 sm:$0xff]   ;;  %s205_s25 = scalar_lea.vmem %s1100_s3, %s1007_s21 }
  0x10   : > { %537 = vmatprep.subr.bf16.mxu1 %v819_v7  ;;  %v839_v30 = vld [vmem:[%s1098_s1 + $0x80] ss:$8 sps:$4 sm:$0xff]   ;;  %v870_v31 = vld [vmem:[%s1098_s1 + $0x164] ss:$8 sps:$4 sm:$0xff]   ;;  %v842_v32 = vld [vmem:[%s1098_s1 + $0x94] ss:$8 sps:$4 sm:$0xff]   ;;  %s210_s29 = scalar_lea.vmem %s1101_s4, %s1007_s21 }
  0x11   : > { %v212_v33 = vld [vmem:[%s200_s28] sm:$0xff]  ;;  %v213_v34 = vld [vmem:[%s200_s28 + $0x8] sm:$0xff]  ;;  %v845_v40 = vld [vmem:[%s1098_s1 + $0x90] ss:$8 sps:$4 sm:$0xff]   ;;  %v283_v2 = vsub.s32 0, %v282_v1  ;;  %v287_v4 = vsub.s32 1, %v282_v1 }
  0x12   : > { %579 = vmatpush1.bf16.msra.mxu0 %v850_v18  ;;  %v217_v35 = vrot.slane %v212_v33, 1  ;;  %v218_v36 = vrot.slane %v213_v34, 1  ;;  %v874_v37 = vld [vmem:[%s1098_s1 + $0x160] ss:$8 sps:$4 sm:$0xff]   ;;  %v223_v38 = vrot.slane %v212_v33, 2  ;;  %v224_v39 = vrot.slane %v213_v34, 2 }
  0x13   : > { %538 = vmatpush1.bf16.msra.mxu1 %v821_v8  ;;  %580 = vmatprep.subr.bf16.mxu0 %v852_v19  ;;  %v876_v41 = vld [vmem:[%s1098_s1 + $0x174] ss:$8 sps:$4 sm:$0xff]   ;;  %v848_v43 = vld [vmem:[%s1098_s1 + $0xa4] ss:$8 sps:$4 sm:$0xff]   ;;  %v880_v45 = vld [vmem:[%s1098_s1 + $0x170] ss:$8 sps:$4 sm:$0xff]   ;;  %v228_v59 = vpack.c.bf16 %v213_v34, %v212_v33 }
  0x14   : > { %539 = vmatprep.subr.bf16.mxu1 %v822_v10  ;;  %v219_v42 = vsel %vm216_vm0, %v217_v35, %v218_v36  ;;  %v225_v46 = vsel %vm222_vm1, %v223_v38, %v224_v39  ;;  %v851_v47 = vld [vmem:[%s1098_s1 + $0xa0] ss:$8 sps:$4 sm:$0xff]   ;;  %v854_v48 = vld [vmem:[%s1098_s1 + $0xb4] ss:$8 sps:$4 sm:$0xff]   ;;  %v857_v50 = vld [vmem:[%s1098_s1 + $0xb0] ss:$8 sps:$4 sm:$0xff]  }
  0x15   : > { %v229_v44 = vpack.c.bf16 %v218_v36, %v219_v42  ;;  %v230_v49 = vpack.c.bf16 %v224_v39, %v225_v46  ;;  %v860_v51 = vld [vmem:[%s1098_s1 + $0xc4] ss:$8 sps:$4 sm:$0xff]   ;;  %v863_v52 = vld [vmem:[%s1098_s1 + $0xc0] ss:$8 sps:$4 sm:$0xff]   ;;  %v866_v53 = vld [vmem:[%s1098_s1 + $0xd4] ss:$8 sps:$4 sm:$0xff]  }
  0x16   : > { %581 = vmatpush1.bf16.msra.mxu0 %v856_v21  ;;  %v869_v54 = vld [vmem:[%s1098_s1 + $0xd0] ss:$8 sps:$4 sm:$0xff]   ;;  %v872_v55 = vld [vmem:[%s1098_s1 + $0xe4] ss:$8 sps:$4 sm:$0xff]   ;;  %v875_v56 = vld [vmem:[%s1098_s1 + $0xe0] ss:$8 sps:$4 sm:$0xff]  }
  0x17   : > { %540 = vmatpush1.bf16.msra.mxu1 %v824_v13  ;;  %582 = vmatprep.subr.bf16.mxu0 %v858_v23  ;;  %v878_v57 = vld [vmem:[%s1098_s1 + $0xf4] ss:$8 sps:$4 sm:$0xff]   ;;  %v881_v58 = vld [vmem:[%s1098_s1 + $0xf0] ss:$8 sps:$4 sm:$0xff]   ;;  %v279_v3 = vld [vmem:[%s1099_s2] sm:$0x3] }
  0x18   : > { %541 = vmatprep.subr.bf16.mxu1 %v825_v14  ;;  %563 = vmatprep.mubr.bf16.mxu1 %v229_v44  ;;  %v284_v5 = vrot.slane %v279_v3, %v283_v2  ;;  %v288_v6 = vrot.slane %v279_v3, %v287_v4  ;;  %vm617_vm2 = vcmask 916480   ;;  %vm619_vm3 = vcmask 914432   ;;  %s891_s26 = smov 16  }
  0x19   : > { %vm633_vm4 = vcmask 130048  }
  0x1a   : > { %583 = vmatpush1.bf16.msra.mxu0 %v862_v26 }
  0x1b   : > { %542 = vmatpush1.bf16.msra.mxu1 %v827_v17  ;;  %584 = vmatprep.subr.bf16.mxu0 %v864_v27 }
  0x1c   : > { %543 = vmatprep.subr.bf16.mxu1 %v828_v20 }
  0x1e   : > { %585 = vmatpush1.bf16.msra.mxu0 %v868_v29 }
  0x1f   : > { %544 = vmatpush1.bf16.msra.mxu1 %v830_v22  ;;  %586 = vmatprep.subr.bf16.mxu0 %v870_v31 }
  0x20   : > { %545 = vmatprep.subr.bf16.mxu1 %v831_v24 }
  0x22   : > { %587 = vmatpush1.bf16.msra.mxu0 %v874_v37 }
  0x23   : > { %546 = vmatpush1.bf16.msra.mxu1 %v833_v25  ;;  %588 = vmatprep.subr.bf16.mxu0 %v876_v41 }
  0x24   : > { %547 = vmatprep.subr.bf16.mxu1 %v836_v28 }
  0x26   : > { %589 = vmatpush1.bf16.msra.mxu0 %v880_v45 }
  0x27   : > { %548 = vmatpush1.bf16.msra.mxu1 %v839_v30 }
  0x28   : > { %549 = vmatprep.subr.bf16.mxu1 %v842_v32 }
  0x29   : > { %607 = vmatmul.mubr.bf16.vlgmr.msra.gmra.mrb[0].mxu0 %v230_v49 }
  0x2b   : > { %550 = vmatpush1.bf16.msra.mxu1 %v845_v40 }
  0x2c   : > { %551 = vmatprep.subr.bf16.mxu1 %v848_v43 }
  0x2f   : > { %552 = vmatpush1.bf16.msra.mxu1 %v851_v47 }
  0x30   : > { %553 = vmatprep.subr.bf16.mxu1 %v854_v48 }
  0x33   : > { %554 = vmatpush1.bf16.msra.mxu1 %v857_v50 }
  0x34   : > { %555 = vmatprep.subr.bf16.mxu1 %v860_v51 }
  0x37   : > { %556 = vmatpush1.bf16.msra.mxu1 %v863_v52 }
  0x38   : > { %557 = vmatprep.subr.bf16.mxu1 %v866_v53 }
  0x3b   : > { %558 = vmatpush1.bf16.msra.mxu1 %v869_v54 }
  0x3c   : > { %559 = vmatprep.subr.bf16.mxu1 %v872_v55 }
  0x3f   : > { %560 = vmatpush1.bf16.msra.mxu1 %v875_v56 }
  0x40   : > { %561 = vmatprep.subr.bf16.mxu1 %v878_v57 }
  0x43   : > { %562 = vmatpush1.bf16.msra.mxu1 %v881_v58 }
  0x46   : > { %564 = vmatmul.mubr.bf16.vlgmr.msra.gmra.mrb[0].mxu1 %v228_v59 }
  0xfc   : > { %v608_v60 = vpop.f32.mrb[0].mxu0 }
  0xfd   : > { %v610_v61 = vpop.f32.mrb[1].mxu0 }
  0xfe   : > { %v612_v62 = vpop.f32.mrb[2].mxu0 }
  0xff   : > { %v614_v63 = vpop.f32.mrb[3].mxu0 }
 0x119   : > { %v565_v7 = vpop.f32.mrb[0].mxu1 }
 0x11a   : > { %v566_v8 = vadd.f32 %v565_v7, %v284_v5  ;;  %v567_v9 = vpop.f32.mrb[1].mxu1 }
 0x11b   : > { %v568_v10 = vadd.f32 %v567_v9, %v288_v6  ;;  %v569_v11 = vpop.f32.mrb[2].mxu1 }
 0x11c   : > { %v570_v12 = vadd.f32 %v569_v11, %v284_v5  ;;  %v571_v13 = vpop.f32.mrb[3].mxu1  ;;  %v609_v14 = vadd.f32 %v608_v60, %v566_v8 }
 0x11d   : > { %v611_v15 = vadd.f32 %v610_v61, %v568_v10  ;;  %v572_v16 = vadd.f32 %v571_v13, %v288_v6 }
 0x11e   : > { %625 = vrot.lane.b32.xlu0 %v609_v14, %s891_s26  ;;  %618 = vst.msk [vmem:[%s205_s25] sm:$0xff] %vm617_vm2, %v609_v14  ;;  %v613_v17 = vadd.f32 %v612_v62, %v570_v12 }
 0x11f   : > { %v615_v18 = vadd.f32 %v614_v63, %v572_v16 }
 0x120   : > { %629 = vrot.lane.b32.xlu1 %v613_v17, %s891_s26  ;;  %620 = vst.msk [vmem:[%s205_s25 + $0x8] sm:$0x3f] %vm619_vm3, %v613_v17 }
 0x122   : > { %627 = vrot.lane.b32.xlu0 %v611_v15, %s891_s26 }
 0x124   : > { %631 = vrot.lane.b32.xlu1 %v615_v18, %s891_s26 }
 0x190   : > { %v626_v19 = vpop.permute.xlu0 %625 }
 0x192   : > { %v630_v20 = vpop.permute.xlu1 %629 }
 0x194   : > { %v628_v21 = vpop.permute.xlu0 %627 }
 0x195   : > { %v634_v22 = vsel %vm633_vm4, %v626_v19, %v628_v21 }
 0x196   : > { %638 = vst.msk [vmem:[%s210_s29] sm:$0xff] %vm617_vm2, %v634_v22  ;;  %v632_v23 = vpop.permute.xlu1 %631 }
 0x197   : > { %v635_v24 = vsel %vm633_vm4, %v630_v20, %v632_v23 }
 0x198   : > { %639 = vst.msk [vmem:[%s210_s29 + $0x8] sm:$0x3f] %vm619_vm3, %v635_v24 }
 0x199 PF: > { %s15_s15 = sadd.s32 1, %s888_s15  }
 0x19a   : > { %p12_p4 = scmp.ge.s32.totalorder %s15_s15, 4  }
 0x19c   :  { %14 = sbr.rel (!%p12_p4) target bundleno = 1 (0x1), region = 74 }

</bundles_post_ra>
